<compile_context>
chip_gen: v6e
topology: v6e:2x2x1
jax: 0.10.0
libtpu: 0.0.40
codegen_flags: <defaults>
</compile_context>

<pallas_src>
import numpy as np
import jax
import jax.numpy as jnp
from jax import lax
from jax.experimental import pallas as pl
from jax.experimental.pallas import tpu as pltpu

# ----------------------------- configuration (small, consistent shapes) -----
ENT_DIM = 32          # args.ent_embed_dim
REL_DIM = 32          # args.rel_embed_dim (must equal ENT_DIM for chequer perm)
PERM = 2              # args.perm
NUM_FILT = 4          # args.num_filters
KSZ = 3               # args.kernel_size
K_H = 8               # args.k_h
K_W = 4               # args.k_w
FLAT_H = K_H          # flat_size_height
FLAT_W = 2 * K_W      # flat_size_width
assert K_H * K_W == ENT_DIM
FLAT_SIZE = FLAT_H * FLAT_W * NUM_FILT * PERM      # 512
BN_EPS = 1e-5
BATCH = 2
NUM_ENT = 256         # multiple of 128 -> lane-dense tiles; 2 grid steps here
TN = 128              # entity tile (N) per grid step


# ----------------------------- chequer permutation (setup glue) -------------
def build_chequer_perm():
    # TODO(synk): the provided module's get_chequer_perm drops one append in the
    # (k even, i odd) branch (a flattened elif), which produces ragged index rows
    # and a shape-incompatible reshape; we use the canonical InteractE chequer
    # permutation (the clearly intended semantics) instead.
    rng = np.random.RandomState(0)
    ent_perm = np.stack([rng.permutation(ENT_DIM) for _ in range(PERM)])
    rel_perm = np.stack([rng.permutation(ENT_DIM) for _ in range(PERM)])
    comb = []
    for k in range(PERM):
        temp, ei, ri = [], 0, 0
        for i in range(FLAT_H):
            for _j in range(FLAT_W // 2):
                if (k % 2 == 0) == (i % 2 == 0):
                    temp.append(ent_perm[k, ei]); ei += 1
                    temp.append(rel_perm[k, ri] + ENT_DIM); ri += 1
                else:
                    temp.append(rel_perm[k, ri] + ENT_DIM); ri += 1
                    temp.append(ent_perm[k, ei]); ei += 1
        comb.append(temp)
    return np.array(comb, dtype=np.int32)


CHEQUER_PERM = build_chequer_perm()                 # (PERM, 64) numpy
CHEQUER_PERM_J = jnp.asarray(CHEQUER_PERM)          # for the reference path


# ----------------------------- small helpers ---------------------------------
def bn_affine(gamma, beta, mean, var):
    scale = gamma / jnp.sqrt(var + BN_EPS)
    shift = beta - mean * scale
    return scale, shift


def circular_pad(x, p):
    # matches InteractE.circular_padding_chw (dims 2 then 3) -- reference only
    x = jnp.concatenate([x[..., -p:, :], x, x[..., :p, :]], axis=2)
    x = jnp.concatenate([x[..., -p:], x, x[..., :p]], axis=3)
    return x


# ----------------------------- fused Pallas kernel ---------------------------
def interacte_fused_kernel(e1_ref, rel_ref, a_ent_ref, a_rel_ref, b1_ref,
                           w2_ref, b2_ref, entT_ref, bias_ref, out_ref):
    # Stage 1: chequer gather + circular grouped conv + bn0 + bn1 folded into
    # A_ent/A_rel; relu.  (B_PAD,32)@(32,512) x2 summed in f32 -> (B_PAD,512)
    h1 = jnp.dot(e1_ref[...], a_ent_ref[...], preferred_element_type=jnp.float32)
    h1 = h1 + jnp.dot(rel_ref[...], a_rel_ref[...],
                      preferred_element_type=jnp.float32)
    h1 = jnp.maximum(h1 + b1_ref[...], 0.0)
    # Stage 2: fc + bn2 (folded into W2/b2) + relu -> (B_PAD, 32)
    h2 = jnp.dot(h1.astype(jnp.bfloat16), w2_ref[...],
                 preferred_element_type=jnp.float32)
    h2 = jnp.maximum(h2 + b2_ref[...], 0.0)
    # Stage 3: entity scoring on this N tile: (B_PAD,32)@(32,TN) + bias
    # NOTE: h1/h2 are recomputed per entity tile.  That is ~0.4 MFLOP per step
    # here (negligible vs. the streamed scoring matmul) and keeps the kernel
    # correct under megacore 'parallel' sharding of the N axis (a scratch-cached
    # h2 gated on program_id==0 would be wrong on the second TensorCore).
    out_ref[...] = (
        jnp.dot(h2.astype(jnp.bfloat16), entT_ref[...],
                preferred_element_type=jnp.float32)
        + bias_ref[...]
    )


# ----------------------------- parameters ------------------------------------
def init_params(key):
    ks = jax.random.split(key, 16)
    # conv_filt: xavier_normal_ on (num_filters, 1, ksz, ksz)
    fan_in = 1 * KSZ * KSZ
    fan_out = NUM_FILT * KSZ * KSZ
    std = float(np.sqrt(2.0 / (fan_in + fan_out)))
    conv_filt = jax.random.normal(ks[0], (NUM_FILT, 1, KSZ, KSZ), jnp.float32) * std
    fc_w = jax.random.normal(ks[1], (ENT_DIM, FLAT_SIZE), jnp.float32) * 0.02
    fc_b = jax.random.normal(ks[2], (ENT_DIM,), jnp.float32) * 0.02
    # TODO(synk): self.b is never registered in the module's __init__; we model it
    # as a deterministic per-entity bias of shape (NUM_ENT,).
    b = jax.random.normal(ks[3], (NUM_ENT,), jnp.float32) * 0.02

    def bn_stats(kg, kb, km, kv, n):
        gamma = 1.0 + 0.2 * jax.random.normal(kg, (n,), jnp.float32)
        beta = 0.1 * jax.random.normal(kb, (n,), jnp.float32)
        mean = 0.1 * jax.random.normal(km, (n,), jnp.float32)
        var = 1.0 + 0.2 * jax.random.uniform(kv, (n,), jnp.float32)
        return gamma, beta, mean, var

    g0, be0, m0, v0 = bn_stats(ks[4], ks[5], ks[6], ks[7], PERM)
    g1, be1, m1, v1 = bn_stats(ks[8], ks[9], ks[10], ks[11], NUM_FILT * PERM)
    g2, be2, m2, v2 = bn_stats(ks[12], ks[13], ks[14], ks[15], ENT_DIM)
    return dict(
        conv_filt=conv_filt, fc_w=fc_w, fc_b=fc_b, b=b,
        bn0_gamma=g0, bn0_beta=be0, bn0_mean=m0, bn0_var=v0,
        bn1_gamma=g1, bn1_beta=be1, bn1_mean=m1, bn1_var=v1,
        bn2_gamma=g2, bn2_beta=be2, bn2_mean=m2, bn2_var=v2,
    )


# ----------------------------- one-time prep (hoisted out of forward) --------
def prepare_inference(params):
    """Fold chequer perm + BN affines + grouped circular conv into bf16 matmul
    operands."""
    s0, t0 = bn_affine(params["bn0_gamma"], params["bn0_beta"],
                       params["bn0_mean"], params["bn0_var"])
    s1, t1 = bn_affine(params["bn1_gamma"], params["bn1_beta"],
                       params["bn1_mean"], params["bn1_var"])
    s2, t2 = bn_affine(params["bn2_gamma"], params["bn2_beta"],
                       params["bn2_mean"], params["bn2_var"])
    s0n, t0n = np.asarray(s0), np.asarray(t0)
    s1n, t1n = np.asarray(s1), np.asarray(t1)
    s2n, t2n = np.asarray(s2), np.asarray(t2)
    w = np.asarray(params["conv_filt"]).reshape(NUM_FILT, KSZ, KSZ)

    # Conv-as-matrix: column order is exactly PyTorch's NCHW flatten order
    # ((p*NF+f)*H + y)*W + x with H=FLAT_W, W=FLAT_H, so fc_w needs no column
    # permutation.  Row order of A is the post-gather order p*HW + y*W + x; the
    # chequer permutation is then folded: A_fold = P_chequer @ A (64, 512).
    H, W = FLAT_W, FLAT_H
    HW = H * W
    A = np.zeros((PERM * HW, FLAT_SIZE), np.float32)
    b1 = np.zeros((FLAT_SIZE,), np.float32)
    for p in range(PERM):
        for f in range(NUM_FILT):
            ch = p * NUM_FILT + f
            scale = s0n[p] * s1n[ch]
            # Valid because circular padding makes every output pixel see the
            # full 3x3 kernel: bn0 shift contributes t0 * sum(w).
            shift = t0n[p] * s1n[ch] * w[f].sum() + t1n[ch]
            for y in range(H):
                for xx in range(W):
                    c = (ch * H + y) * W + xx
                    b1[c] = shift
                    for dy in range(KSZ):
                        for dx in range(KSZ):
                            yi = (y + dy - 1) % H
                            xi = (xx + dx - 1) % W
                            A[p * HW + yi * W + xi, c] += scale * w[f, dy, dx]

    # Fold chequer gather + concat:  (x_gathered @ A) == comb @ A_fold, with
    # comb = [e1 | rel]  =>  split A_fold into the e1 and rel halves.
    perm_flat = CHEQUER_PERM.reshape(-1)                # (PERM*HW,), values in [0, 2D)
    A_fold = np.zeros((2 * ENT_DIM, FLAT_SIZE), np.float32)
    np.add.at(A_fold, perm_flat, A)
    A_ent = A_fold[:ENT_DIM]                            # (32, 512)
    A_rel = A_fold[ENT_DIM:]                            # (32, 512)

    fc_w = np.asarray(params["fc_w"])                   # (D, flat)
    fc_b = np.asarray(params["fc_b"])                   # (D,)
    W2 = (fc_w.T * s2n[None, :]).astype(np.float32)     # (flat, D), bn2 folded
    b2 = (fc_b * s2n + t2n).astype(np.float32)          # (D,)

    return dict(
        A_ent=jnp.asarray(A_ent, dtype=jnp.bfloat16),   # (32, 512) bf16
        A_rel=jnp.asarray(A_rel, dtype=jnp.bfloat16),   # (32, 512) bf16
        b1=jnp.asarray(b1)[None, :],                    # (1, 512)  f32
        W2=jnp.asarray(W2, dtype=jnp.bfloat16),         # (512, 32) bf16
        b2=jnp.asarray(b2)[None, :],                    # (1, 32)   f32
        ent_bias=jnp.asarray(params["b"])[None, :],     # (1, NUM_ENT) f32
    )


def prepare_entity_table(all_ent_emb):
    """Hoisted: transpose + bf16-cast the (static at inference) entity table once,
    so the kernel's scoring RHS is a plain lane-dense [K, N] operand."""
    return jnp.asarray(all_ent_emb).T.astype(jnp.bfloat16)   # (ENT_DIM, NUM_ENT)


# ----------------------------- forward (single gridded pallas_call) ----------
@jax.jit
def interacte_forward(prep, entT, e1_emb, rel_emb):
    B = e1_emb.shape[0]
    B_PAD = max(8, ((B + 7) // 8) * 8)     # sublane-dense M; unmasked (B_PAD,128) stores
    pad = ((0, B_PAD - B), (0, 0))
    e1 = jnp.pad(e1_emb.astype(jnp.bfloat16), pad)
    rl = jnp.pad(rel_emb.astype(jnp.bfloat16), pad)
    num_ent = entT.shape[1]
    assert num_ent % TN == 0

    resident = lambda j: (0, 0)            # weights stay resident across the N grid
    out = pl.pallas_call(
        interacte_fused_kernel,
        out_shape=jax.ShapeDtypeStruct((B_PAD, num_ent), jnp.float32),
        grid_spec=pltpu.PrefetchScalarGridSpec(
            num_scalar_prefetch=0,
            grid=(num_ent // TN,),
            in_specs=[
                pl.BlockSpec((B_PAD, ENT_DIM), resident),       # e1 (bf16)
                pl.BlockSpec((B_PAD, REL_DIM), resident),       # rel (bf16)
                pl.BlockSpec((ENT_DIM, FLAT_SIZE), resident),   # A_ent (bf16)
                pl.BlockSpec((REL_DIM, FLAT_SIZE), resident),   # A_rel (bf16)
                pl.BlockSpec((1, FLAT_SIZE), resident),         # b1 (f32)
                pl.BlockSpec((FLAT_SIZE, ENT_DIM), resident),   # W2 (bf16)
                pl.BlockSpec((1, ENT_DIM), resident),           # b2 (f32)
                pl.BlockSpec((ENT_DIM, TN), lambda j: (0, j)),  # entT tile (bf16)
                pl.BlockSpec((1, TN), lambda j: (0, j)),        # ent bias tile (f32)
            ],
            out_specs=pl.BlockSpec((B_PAD, TN), lambda j: (0, j)),
        ),
        # 'parallel' N axis: disjoint output tiles; v7x can shard it across its
        # 2 TensorCores.  Tiles are tiny here; at real vocabularies keep
        # 2 buffers x (ENT_DIM x tn) + resident A/W2 within the scoped VMEM
        # budget (halve tn on v7x's 64 MiB vs v6e's 128 MiB).
        compiler_params=pltpu.CompilerParams(
            dimension_semantics=("parallel",)),
    )(e1, rl, prep["A_ent"], prep["A_rel"], prep["b1"],
      prep["W2"], prep["b2"], entT, prep["ent_bias"])
    return out[:B]


# ----------------------------- pure-JAX reference (PyTorch semantics) --------
def interacte_reference(params, e1_emb, rel_emb, all_ent_emb):
    B = e1_emb.shape[0]
    H, W = FLAT_W, FLAT_H
    pad = KSZ // 2
    comb = jnp.concatenate([e1_emb, rel_emb], axis=1)
    stack = comb[:, CHEQUER_PERM_J].reshape(B, PERM, H, W)
    s0, t0 = bn_affine(params["bn0_gamma"], params["bn0_beta"],
                       params["bn0_mean"], params["bn0_var"])
    stack = stack * s0[None, :, None, None] + t0[None, :, None, None]
    padded = circular_pad(stack, pad)
    w = jnp.tile(params["conv_filt"], (PERM, 1, 1, 1))      # == torch .repeat(perm,1,1,1)
    x = lax.conv_general_dilated(
        padded, w, (1, 1), "VALID",
        dimension_numbers=("NCHW", "OIHW", "NCHW"),
        feature_group_count=PERM,
    )
    s1, t1 = bn_affine(params["bn1_gamma"], params["bn1_beta"],
                       params["bn1_mean"], params["bn1_var"])
    x = x * s1[None, :, None, None] + t1[None, :, None, None]
    x = jnp.maximum(x, 0.0)
    x = x.reshape(B, FLAT_SIZE)
    h = x @ params["fc_w"].T + params["fc_b"][None, :]
    s2, t2 = bn_affine(params["bn2_gamma"], params["bn2_beta"],
                       params["bn2_mean"], params["bn2_var"])
    h = h * s2[None, :] + t2[None, :]
    h = jnp.maximum(h, 0.0)
    return h @ all_ent_emb.T + params["b"][None, :]


# ----------------------------- main -------------------------------------------
if __name__ == "__main__":
    key = jax.random.PRNGKey(0)
    k1, k2, k3, k4 = jax.random.split(key, 4)
    e1_emb = jax.random.normal(k1, (BATCH, ENT_DIM), jnp.float32)
    rel_emb = jax.random.normal(k2, (BATCH, REL_DIM), jnp.float32)
    all_ent_emb = jax.random.normal(k3, (NUM_ENT, ENT_DIM), jnp.float32)
    params = init_params(k4)
    prep = prepare_inference(params)              # runs once, not per call
    entT = prepare_entity_table(all_ent_emb)      # static at inference -> hoisted

    scores = interacte_forward(prep, entT, e1_emb, rel_emb)
    scores = jax.block_until_ready(scores)
    assert scores.shape == (BATCH, NUM_ENT)

    ref = interacte_reference(params, e1_emb, rel_emb, all_ent_emb)
    # bf16 weights/activations with f32 accumulation vs. an all-f32 reference:
    # expected abs error ~1e-2 at these magnitudes.
    np.testing.assert_allclose(np.asarray(scores), np.asarray(ref),
                               atol=5e-2, rtol=5e-2)
    print("KERNEL_OK")
</pallas_src>

<mosaic_0001>
module attributes {stable_mosaic.version = 11 : i64} {
  func.func @interacte_fused_kernel(%arg0: i32, %arg1: memref<8x32xbf16, #tpu.memory_space<vmem>>, %arg2: memref<8x32xbf16, #tpu.memory_space<vmem>>, %arg3: memref<32x512xbf16, #tpu.memory_space<vmem>>, %arg4: memref<32x512xbf16, #tpu.memory_space<vmem>>, %arg5: memref<1x512xf32, #tpu.memory_space<vmem>>, %arg6: memref<512x32xbf16, #tpu.memory_space<vmem>>, %arg7: memref<1x32xf32, #tpu.memory_space<vmem>>, %arg8: memref<32x128xbf16, #tpu.memory_space<vmem>>, %arg9: memref<1x128xf32, #tpu.memory_space<vmem>>, %arg10: memref<8x128xf32, #tpu.memory_space<vmem>>) attributes {dimension_semantics = [#tpu.dimension_semantics<parallel>], iteration_bounds = array<i64: 2>, scalar_prefetch = 0 : i64, scratch_operands = 0 : i64, tpu.core_type = #tpu.core_type<tc>, window_params = [{pipeline_mode = #tpu.pipeline_mode<synchronous>, transform_indices = @transform_0, window_bounds = array<i64: 8, 32>}, {pipeline_mode = #tpu.pipeline_mode<synchronous>, transform_indices = @transform_1, window_bounds = array<i64: 8, 32>}, {pipeline_mode = #tpu.pipeline_mode<synchronous>, transform_indices = @transform_2, window_bounds = array<i64: 32, 512>}, {pipeline_mode = #tpu.pipeline_mode<synchronous>, transform_indices = @transform_3, window_bounds = array<i64: 32, 512>}, {pipeline_mode = #tpu.pipeline_mode<synchronous>, transform_indices = @transform_4, window_bounds = array<i64: 1, 512>}, {pipeline_mode = #tpu.pipeline_mode<synchronous>, transform_indices = @transform_5, window_bounds = array<i64: 512, 32>}, {pipeline_mode = #tpu.pipeline_mode<synchronous>, transform_indices = @transform_6, window_bounds = array<i64: 1, 32>}, {transform_indices = @transform_7, window_bounds = array<i64: 32, 128>}, {transform_indices = @transform_8, window_bounds = array<i64: 1, 128>}, {transform_indices = @transform_9, window_bounds = array<i64: 8, 128>}]} {
    %c0 = arith.constant 0 : index
    %c0_0 = arith.constant 0 : index
    %0 = vector.load %arg1[%c0, %c0_0] : memref<8x32xbf16, #tpu.memory_space<vmem>>, vector<8x32xbf16>
    %c0_1 = arith.constant 0 : index
    %c0_2 = arith.constant 0 : index
    %1 = vector.load %arg3[%c0_1, %c0_2] : memref<32x512xbf16, #tpu.memory_space<vmem>>, vector<32x512xbf16>
    %cst = arith.constant dense<0.000000e+00> : vector<8x512xf32>
    %2 = tpu.matmul %0, %1, %cst {dimension_numbers = #tpu.dot_dimension_numbers<[1], [0], [0], [1], [0, 0, 1, 1], [], []>} : vector<8x32xbf16>, vector<32x512xbf16>, vector<8x512xf32> -> vector<8x512xf32>
    %c0_3 = arith.constant 0 : index
    %c0_4 = arith.constant 0 : index
    %3 = vector.load %arg2[%c0_3, %c0_4] : memref<8x32xbf16, #tpu.memory_space<vmem>>, vector<8x32xbf16>
    %c0_5 = arith.constant 0 : index
    %c0_6 = arith.constant 0 : index
    %4 = vector.load %arg4[%c0_5, %c0_6] : memref<32x512xbf16, #tpu.memory_space<vmem>>, vector<32x512xbf16>
    %cst_7 = arith.constant dense<0.000000e+00> : vector<8x512xf32>
    %5 = tpu.matmul %3, %4, %cst_7 {dimension_numbers = #tpu.dot_dimension_numbers<[1], [0], [0], [1], [0, 0, 1, 1], [], []>} : vector<8x32xbf16>, vector<32x512xbf16>, vector<8x512xf32> -> vector<8x512xf32>
    %6 = arith.addf %2, %5 : vector<8x512xf32>
    %c0_8 = arith.constant 0 : index
    %c0_9 = arith.constant 0 : index
    %7 = vector.load %arg5[%c0_8, %c0_9] : memref<1x512xf32, #tpu.memory_space<vmem>>, vector<1x512xf32>
    %8 = vector.broadcast %7 : vector<1x512xf32> to vector<8x512xf32>
    %9 = arith.addf %6, %8 : vector<8x512xf32>
    %cst_10 = arith.constant 0.000000e+00 : f32
    %10 = vector.broadcast %cst_10 : f32 to vector<8x512xf32>
    %11 = arith.maximumf %9, %10 : vector<8x512xf32>
    %12 = arith.truncf %11 : vector<8x512xf32> to vector<8x512xbf16>
    %c0_11 = arith.constant 0 : index
    %c0_12 = arith.constant 0 : index
    %13 = vector.load %arg6[%c0_11, %c0_12] : memref<512x32xbf16, #tpu.memory_space<vmem>>, vector<512x32xbf16>
    %cst_13 = arith.constant dense<0.000000e+00> : vector<8x32xf32>
    %14 = tpu.matmul %12, %13, %cst_13 {dimension_numbers = #tpu.dot_dimension_numbers<[1], [0], [0], [1], [0, 0, 1, 1], [], []>} : vector<8x512xbf16>, vector<512x32xbf16>, vector<8x32xf32> -> vector<8x32xf32>
    %c0_14 = arith.constant 0 : index
    %c0_15 = arith.constant 0 : index
    %15 = vector.load %arg7[%c0_14, %c0_15] : memref<1x32xf32, #tpu.memory_space<vmem>>, vector<1x32xf32>
    %16 = vector.broadcast %15 : vector<1x32xf32> to vector<8x32xf32>
    %17 = arith.addf %14, %16 : vector<8x32xf32>
    %cst_16 = arith.constant 0.000000e+00 : f32
    %18 = vector.broadcast %cst_16 : f32 to vector<8x32xf32>
    %19 = arith.maximumf %17, %18 : vector<8x32xf32>
    %20 = arith.truncf %19 : vector<8x32xf32> to vector<8x32xbf16>
    %c0_17 = arith.constant 0 : index
    %c0_18 = arith.constant 0 : index
    %21 = vector.load %arg8[%c0_17, %c0_18] : memref<32x128xbf16, #tpu.memory_space<vmem>>, vector<32x128xbf16>
    %cst_19 = arith.constant dense<0.000000e+00> : vector<8x128xf32>
    %22 = tpu.matmul %20, %21, %cst_19 {dimension_numbers = #tpu.dot_dimension_numbers<[1], [0], [0], [1], [0, 0, 1, 1], [], []>} : vector<8x32xbf16>, vector<32x128xbf16>, vector<8x128xf32> -> vector<8x128xf32>
    %c0_20 = arith.constant 0 : index
    %c0_21 = arith.constant 0 : index
    %23 = vector.load %arg9[%c0_20, %c0_21] : memref<1x128xf32, #tpu.memory_space<vmem>>, vector<1x128xf32>
    %24 = vector.broadcast %23 : vector<1x128xf32> to vector<8x128xf32>
    %25 = arith.addf %22, %24 : vector<8x128xf32>
    %c0_22 = arith.constant 0 : index
    %c0_23 = arith.constant 0 : index
    %26 = vector.load %arg10[%c0_22, %c0_23] : memref<8x128xf32, #tpu.memory_space<vmem>>, vector<8x128xf32>
    tpu.vector_store %arg10[%c0_22, %c0_23], %25 {strides = array<i32>} : memref<8x128xf32, #tpu.memory_space<vmem>>, vector<8x128xf32>,
    return
  }
  func.func @transform_0(%arg0: i32) -> (i32, i32) {
    %c0_i32 = arith.constant 0 : i32
    %c0_i32_0 = arith.constant 0 : i32
    %c0_i32_1 = arith.constant 0 : i32
    return %c0_i32, %c0_i32_0 : i32, i32
  }
  func.func @transform_1(%arg0: i32) -> (i32, i32) {
    %c0_i32 = arith.constant 0 : i32
    %c0_i32_0 = arith.constant 0 : i32
    %c0_i32_1 = arith.constant 0 : i32
    return %c0_i32, %c0_i32_0 : i32, i32
  }
  func.func @transform_2(%arg0: i32) -> (i32, i32) {
    %c0_i32 = arith.constant 0 : i32
    %c0_i32_0 = arith.constant 0 : i32
    %c0_i32_1 = arith.constant 0 : i32
    return %c0_i32, %c0_i32_0 : i32, i32
  }
  func.func @transform_3(%arg0: i32) -> (i32, i32) {
    %c0_i32 = arith.constant 0 : i32
    %c0_i32_0 = arith.constant 0 : i32
    %c0_i32_1 = arith.constant 0 : i32
    return %c0_i32, %c0_i32_0 : i32, i32
  }
  func.func @transform_4(%arg0: i32) -> (i32, i32) {
    %c0_i32 = arith.constant 0 : i32
    %c0_i32_0 = arith.constant 0 : i32
    %c0_i32_1 = arith.constant 0 : i32
    return %c0_i32, %c0_i32_0 : i32, i32
  }
  func.func @transform_5(%arg0: i32) -> (i32, i32) {
    %c0_i32 = arith.constant 0 : i32
    %c0_i32_0 = arith.constant 0 : i32
    %c0_i32_1 = arith.constant 0 : i32
    return %c0_i32, %c0_i32_0 : i32, i32
  }
  func.func @transform_6(%arg0: i32) -> (i32, i32) {
    %c0_i32 = arith.constant 0 : i32
    %c0_i32_0 = arith.constant 0 : i32
    %c0_i32_1 = arith.constant 0 : i32
    return %c0_i32, %c0_i32_0 : i32, i32
  }
  func.func @transform_7(%arg0: i32) -> (i32, i32) {
    %c0_i32 = arith.constant 0 : i32
    %c0_i32_0 = arith.constant 0 : i32
    return %c0_i32, %arg0 : i32, i32
  }
  func.func @transform_8(%arg0: i32) -> (i32, i32) {
    %c0_i32 = arith.constant 0 : i32
    %c0_i32_0 = arith.constant 0 : i32
    return %c0_i32, %arg0 : i32, i32
  }
  func.func @transform_9(%arg0: i32) -> (i32, i32) {
    %c0_i32 = arith.constant 0 : i32
    %c0_i32_0 = arith.constant 0 : i32
    return %c0_i32, %arg0 : i32, i32
  }
}

</mosaic_0001>

<bundles_post_ra>
// kernel: interacte_forward.1
= control target key start
LH: loop header
LB: loop body
LE: loop exit
PB: predicated region body
PF: predicated region fallthrough
CT: control target
= control target key end

     0   :  { %s1469_s30 = smov 0   ;;  %s1471_s10 = smov 0   ;;  %s1687_s0 = inlined_call_operand.vmem [shape: bf16[8,32], index: 0, kind: input, shape index: {}]   ;;  %s1688_s1 = inlined_call_operand.vmem [shape: bf16[8,32], index: 1, kind: input, shape index: {}]   ;;  %s1689_s2 = inlined_call_operand.vmem [shape: bf16[32,512], index: 2, kind: input, shape index: {}]   ;;  %s1690_s3 = inlined_call_operand.vmem [shape: bf16[32,512], index: 3, kind: input, shape index: {}]   ;;  %s1691_s4 = inlined_call_operand.vmem [shape: f32[1,512], index: 4, kind: input, shape index: {}]   ;;  %s1692_s5 = inlined_call_operand.vmem [shape: bf16[512,32], index: 5, kind: input, shape index: {}]   ;;  %s1693_s6 = inlined_call_operand.vmem [shape: f32[1,32], index: 6, kind: input, shape index: {}]   ;;  %s1694_s7 = inlined_call_operand.vmem [shape: bf16[32,256], index: 7, kind: input, shape index: {}]   ;;  %s1695_s8 = inlined_call_operand.vmem [shape: f32[1,256], index: 8, kind: input, shape index: {}]   ;;  %s1696_s9 = inlined_call_operand.vmem [shape: f32[8,256], index: 9, kind: output, shape index: {}]  }
   0x1   :  { %s1473_s11 = smov 0  }
   0x2 LB: > { %s1184_s12 = sadd.s32 4294967295, %s1414_s11   ;;  %s1486_s13 = sadd.s32 1, %s1414_s11   ;;  %s1414_s11 = sphi %s1473_s11, %s1699_s11   ;;  %s1410_s10 = sphi %s1471_s10, %s1698_s10   ;;  %s1406_s30 = sphi %s1469_s30, %s1697_s30  }
   0x3   : > { %s170_s14 = ssub.s32 %s1414_s11, %s1486_s13  ;;  %s173_s15 = sadd.s32 1, %s1410_s10 }
   0x4   : > { %p171_p0 = scmp.eq.s32.totalorder %s170_s14, 0  ;;  %p180_p1 = scmp.ne.s32.totalorder %s1410_s10, %s1406_s30 }
   0x5   : > { %p181_p2 = scmp.eq.s32.totalorder %s1414_s11, 0  ;;  %p1187_p4 = scmp.ge.s32.totalorder %s1414_s11, 2 }
   0x6   : > { %s1495_s16 = scalar_select %p171_p0, %s1410_s10, %s173_s15  }
   0x7   : > { %p182_p3 = por %p181_p2, %p180_p1  ;;  %279 = sbr.rel (%p1187_p4) target bundleno = 18 (0x12), region = 44 }
   0xc   : > { %282 = sbr.rel (!%p182_p3) target bundleno = 18 (0x12), region = 48  ;;  %s284_s17 = sand.u32 (%p182_p3), 1, %s1410_s10  }
   0xd   : > { %s1189_s18 = sshll.u32 (%p182_p3), %s1414_s11, 2  ;;  %s1188_s19 = sshll.u32 (%p182_p3), %s284_s17, 4 }
   0xe   : > { %s288_s22 = scalar_lea.vmem (%p182_p3), %s1694_s7, %s1189_s18  ;;  %s286_s23 = scalar_lea.vmem (%p182_p3), [#allocation2], %s1188_s19 }
   0xf   : > { %v305_v0 = vld [vmem:[%s288_s22] sm:$0xf] (%p182_p3)  ;;  %v307_v1 = vld [vmem:[%s288_s22 + $0x8] sm:$0xf] (%p182_p3)  ;;  %v309_v2 = vld [vmem:[%s288_s22 + $0x10] sm:$0xf] (%p182_p3) }
  0x10   : > { %306 = vst [vmem:[%s286_s23] sm:$0xf] (%p182_p3), %v305_v0  ;;  %308 = vst [vmem:[%s286_s23 + $0x4] sm:$0xf] (%p182_p3), %v307_v1  ;;  %v311_v3 = vld [vmem:[%s288_s22 + $0x18] sm:$0xf] (%p182_p3) }
  0x11   : > { %310 = vst [vmem:[%s286_s23 + $0x8] sm:$0xf] %v309_v2  ;;  %312 = vst [vmem:[%s286_s23 + $0xc] sm:$0xf] %v311_v3 }
  0x12 PF: > { %p1190_p5 = scmp.ge.s32.totalorder %s1414_s11, 1  ;;  %p349_p6 = scmp.lt.s32.totalorder %s1414_s11, 3 }
  0x14   : > { %p350_p7 = pnand %p1190_p5, %p349_p6 }
  0x15   : > { %s356_s21 = sand.u32 (!%p350_p7), 1, %s1406_s30   ;;  %p393_p8 = scmp.lt.s32.totalorder (!%p350_p7), %s1184_s12, 1 }
  0x16   : > { %353 = sbr.rel (%p350_p7) target bundleno = 653 (0x28d), region = 93  ;;  %s1191_s22 = sshll.u32 (!%p350_p7), %s356_s21, 4 }
  0x17   : > { %s358_s23 = scalar_lea.vmem (!%p350_p7), [#allocation2], %s1191_s22 }
  0x1b   : > { %v1334_v4 = vld [vmem:[%s1690_s3 + $0x24] ss:$16 sps:$4 sm:$0xff]   ;;  %v1336_v5 = vld [vmem:[%s1690_s3 + $0x2c] ss:$16 sps:$4 sm:$0xff]   ;;  %v1416_v6 = vmov 0   ;;  %vm459_vm0 = vcmask 261120   ;;  %v672_v55 = vlaneseq }
  0x1c   : > { %495 = vmatprep.mubr.bf16.mxu0 %v1416_v6  ;;  %536 = vmatprep.mubr.bf16.mxu1 %v1416_v6  ;;  %v1338_v7 = vld [vmem:[%s1690_s3 + $0x20] ss:$16 sps:$4 sm:$0xff]   ;;  %v1339_v8 = vld [vmem:[%s1690_s3 + $0x28] ss:$16 sps:$4 sm:$0xff]   ;;  %v1340_v9 = vld [vmem:[%s1690_s3 + $0x4] ss:$16 sps:$4 sm:$0xff]  }
  0x1d   : > { %475 = vmatprep.subr.bf16.mxu0 %v1334_v4  ;;  %516 = vmatprep.subr.bf16.mxu1 %v1336_v5  ;;  %v1342_v10 = vld [vmem:[%s1690_s3 + $0xc] ss:$16 sps:$4 sm:$0xff]   ;;  %v1344_v11 = vld [vmem:[%s1690_s3] ss:$16 sps:$4 sm:$0xff]   ;;  %v1345_v12 = vld [vmem:[%s1690_s3 + $0x8] ss:$16 sps:$4 sm:$0xff]  }
  0x1e   : > { %476 = vmatpush1.bf16.msra.mxu0 %v1338_v7  ;;  %517 = vmatpush1.bf16.msra.mxu1 %v1339_v8  ;;  %v410_v13 = vld [vmem:[%s1688_s1] sm:$0xf]  ;;  %v1348_v15 = vld [vmem:[%s1689_s2 + $0x24] ss:$16 sps:$4 sm:$0xff]   ;;  %v1349_v16 = vld [vmem:[%s1689_s2 + $0x28] ss:$16 sps:$4 sm:$0xff]  }
  0x1f   : > { %477 = vmatprep.subr.bf16.mxu0 %v1340_v9  ;;  %518 = vmatprep.subr.bf16.mxu1 %v1342_v10  ;;  %v1346_v14 = vld [vmem:[%s1689_s2 + $0x20] ss:$16 sps:$4 sm:$0xff]   ;;  %v1351_v17 = vld [vmem:[%s1689_s2 + $0x2c] ss:$16 sps:$4 sm:$0xff]   ;;  %v1354_v18 = vld [vmem:[%s1689_s2 + $0x4] ss:$16 sps:$4 sm:$0xff]  }
  0x20   : > { %v1352_v19 = vld [vmem:[%s1689_s2] ss:$16 sps:$4 sm:$0xff]   ;;  %v1357_v20 = vld [vmem:[%s1689_s2 + $0xc] ss:$16 sps:$4 sm:$0xff]   ;;  %v1355_v21 = vld [vmem:[%s1689_s2 + $0x8] ss:$16 sps:$4 sm:$0xff]  }
  0x21   : > { %v1358_v22 = vld [vmem:[%s1692_s5 + $0x78] sm:$0xff]   ;;  %v401_v24 = vld [vmem:[%s1687_s0] sm:$0xf]  ;;  %v1362_v27 = vld [vmem:[%s1692_s5 + $0x70] sm:$0xff]   ;;  %v673_v56 = vshrl.u32 %v672_v55, 7  ;;  %vm1418_vm1 = vmmov 0  }
  0x22   : > { %478 = vmatpush1.bf16.msra.mxu0 %v1344_v11  ;;  %519 = vmatpush1.bf16.msra.mxu1 %v1345_v12  ;;  %v1359_v23 = vld [vmem:[%s1692_s5 + $0xf8] sm:$0xff]   ;;  %v1363_v28 = vld [vmem:[%s1692_s5 + $0xf0] sm:$0xff]   ;;  %v1366_v31 = vld [vmem:[%s1692_s5 + $0x68] sm:$0xff]   ;;  %s1701_s12 = smov (!%p393_p8, %s1184_s12), 1 }
  0x23   : > { %600 = vmatprep.subr.bf16.mxu0 %v1348_v15  ;;  %641 = vmatprep.subr.bf16.mxu1 %v1351_v17  ;;  %v1360_v25 = vld [vmem:[%s1692_s5 + $0x38] sm:$0xff]   ;;  %v1364_v29 = vld [vmem:[%s1692_s5 + $0x30] sm:$0xff]   ;;  %v1367_v32 = vld [vmem:[%s1692_s5 + $0xe8] sm:$0xff]   ;;  %v674_v61 = vsub.s32 0, %v673_v56  ;;  %v682_v62 = vsub.s32 2, %v673_v56  ;;  %v678_v2 = vsub.s32 1, %v673_v56  ;;  %s395_s27 = scalar_lea.vmem %s1695_s8, %s1701_s12 }
  0x24   : > { %v1361_v26 = vld [vmem:[%s1692_s5 + $0xb8] sm:$0xff]   ;;  %v1365_v30 = vld [vmem:[%s1692_s5 + $0xb0] sm:$0xff]   ;;  %v1368_v33 = vld [vmem:[%s1692_s5 + $0x28] sm:$0xff]   ;;  %v686_v3 = vsub.s32 3, %v673_v56  ;;  %s1192_s28 = sshll.u32 %s1701_s12, 3 }
  0x25   : > { %1201 = vmatmul.mubr.msk.bf16.vlgmr.msra.gmra.mxu0 %vm459_vm0, %v410_v13  ;;  %1202 = vmatmul.mubr.msk.bf16.vlgmr.msra.gmra.mxu1 %vm459_vm0, %v410_v13  ;;  %v1369_v34 = vld [vmem:[%s1692_s5 + $0xa8] sm:$0xff]   ;;  %v1370_v35 = vld [vmem:[%s1692_s5 + $0x60] sm:$0xff]   ;;  %v1374_v39 = vld [vmem:[%s1692_s5 + $0x58] sm:$0xff]   ;;  %s399_s15 = scalar_lea.vmem %s1696_s9, %s1192_s28 }
  0x26   : > { %601 = vmatpush1.bf16.msra.mxu0 %v1346_v14  ;;  %642 = vmatpush1.bf16.msra.mxu1 %v1349_v16  ;;  %v1371_v36 = vld [vmem:[%s1692_s5 + $0xe0] sm:$0xff]   ;;  %v1375_v40 = vld [vmem:[%s1692_s5 + $0xd8] sm:$0xff]   ;;  %v1378_v43 = vld [vmem:[%s1692_s5 + $0x50] sm:$0xff]  }
  0x27   : > { %602 = vmatprep.subr.bf16.mxu0 %v1354_v18  ;;  %643 = vmatprep.subr.bf16.mxu1 %v1357_v20  ;;  %v1372_v37 = vld [vmem:[%s1692_s5 + $0x20] sm:$0xff]   ;;  %v1376_v41 = vld [vmem:[%s1692_s5 + $0x18] sm:$0xff]   ;;  %v1379_v44 = vld [vmem:[%s1692_s5 + $0xd0] sm:$0xff]  }
  0x28   : > { %620 = vmatprep.mubr.bf16.mxu0 %v1416_v6  ;;  %661 = vmatprep.mubr.bf16.mxu1 %v1416_v6  ;;  %v1373_v38 = vld [vmem:[%s1692_s5 + $0xa0] sm:$0xff]   ;;  %v1377_v42 = vld [vmem:[%s1692_s5 + $0x98] sm:$0xff]   ;;  %v1380_v45 = vld [vmem:[%s1692_s5 + $0x10] sm:$0xff]  }
  0x29   : > { %v1381_v46 = vld [vmem:[%s1692_s5 + $0x90] sm:$0xff]   ;;  %v1382_v47 = vld [vmem:[%s1692_s5 + $0x48] sm:$0xff]   ;;  %v1386_v51 = vld [vmem:[%s1692_s5 + $0x40] sm:$0xff]  }
  0x2a   : > { %603 = vmatpush1.bf16.msra.mxu0 %v1352_v19  ;;  %644 = vmatpush1.bf16.msra.mxu1 %v1355_v21  ;;  %v1383_v48 = vld [vmem:[%s1692_s5 + $0xc8] sm:$0xff]   ;;  %v1387_v52 = vld [vmem:[%s1692_s5 + $0xc0] sm:$0xff]  }
  0x2b   : > { %1252 = vmatprep.subr.bf16.mxu0 %v1358_v22  ;;  %1274 = vmatprep.subr.bf16.mxu1 %v1359_v23  ;;  %v1384_v49 = vld [vmem:[%s1692_s5 + $0x8] sm:$0xff]   ;;  %v1388_v53 = vld [vmem:[%s1692_s5] sm:$0xff]  }
  0x2c   : > { %v1385_v50 = vld [vmem:[%s1692_s5 + $0x88] sm:$0xff]   ;;  %v1389_v54 = vld [vmem:[%s1692_s5 + $0x80] sm:$0xff]  }
  0x2d   : > { %1211 = vmatmul.mubr.msk.bf16.vlgmr.msra.gmra.mxu0 %vm459_vm0, %v401_v24  ;;  %1212 = vmatmul.mubr.msk.bf16.vlgmr.msra.gmra.mxu1 %vm459_vm0, %v401_v24  ;;  %v670_v1 = vld [vmem:[%s1691_s4] sm:$0xf] }
  0x2e   : > { %1253 = vmatpush3.bf16.msra.mxu0 %v1360_v25  ;;  %1275 = vmatpush3.bf16.msra.mxu1 %v1361_v26  ;;  %v675_v6 = vrot.slane %v670_v1, %v674_v61  ;;  %v683_v7 = vrot.slane %v670_v1, %v682_v62  ;;  %v679_v12 = vrot.slane %v670_v1, %v678_v2 }
  0x2f   : > { %1254 = vmatprep.subr.bf16.mxu0 %v1362_v27  ;;  %1276 = vmatprep.subr.bf16.mxu1 %v1363_v28  ;;  %v687_v13 = vrot.slane %v670_v1, %v686_v3 }
  0x32   : > { %1255 = vmatpush3.bf16.msra.mxu0 %v1364_v29  ;;  %1277 = vmatpush3.bf16.msra.mxu1 %v1365_v30 }
  0x33   : > { %1256 = vmatprep.subr.bf16.mxu0 %v1366_v31  ;;  %1278 = vmatprep.subr.bf16.mxu1 %v1367_v32 }
  0x36   : > { %1257 = vmatpush3.bf16.msra.mxu0 %v1368_v33  ;;  %1279 = vmatpush3.bf16.msra.mxu1 %v1369_v34  ;;  %v1390_v34 = vld [vmem:[%s358_s23 + $0x8] sm:$0xff]  }
  0x37   : > { %1258 = vmatprep.subr.bf16.mxu0 %v1370_v35  ;;  %1280 = vmatprep.subr.bf16.mxu1 %v1371_v36  ;;  %v1417_v35 = vmov 0.0   ;;  %v1391_v36 = vld [vmem:[%s358_s23] sm:$0xff]  }
  0x3a   : > { %1259 = vmatpush3.bf16.msra.mxu0 %v1372_v37  ;;  %1281 = vmatpush3.bf16.msra.mxu1 %v1373_v38 }
  0x3b   : > { %1260 = vmatprep.subr.bf16.mxu0 %v1374_v39  ;;  %1282 = vmatprep.subr.bf16.mxu1 %v1375_v40  ;;  %v1213_v39 = vld [vmem:[%s1693_s6] ss:$0 sm:$0xff] }
  0x3e   : > { %1261 = vmatpush3.bf16.msra.mxu0 %v1376_v41  ;;  %1283 = vmatpush3.bf16.msra.mxu1 %v1377_v42 }
  0x3f   : > { %1262 = vmatprep.subr.bf16.mxu0 %v1378_v43  ;;  %1284 = vmatprep.subr.bf16.mxu1 %v1379_v44 }
  0x42   : > { %1263 = vmatpush3.bf16.msra.mxu0 %v1380_v45  ;;  %1285 = vmatpush3.bf16.msra.mxu1 %v1381_v46 }
  0x43   : > { %1264 = vmatprep.subr.bf16.mxu0 %v1382_v47  ;;  %1286 = vmatprep.subr.bf16.mxu1 %v1383_v48 }
  0x46   : > { %1265 = vmatpush3.bf16.msra.mxu0 %v1384_v49  ;;  %1287 = vmatpush3.bf16.msra.mxu1 %v1385_v50 }
  0x47   : > { %1266 = vmatprep.subr.bf16.mxu0 %v1386_v51  ;;  %1288 = vmatprep.subr.bf16.mxu1 %v1387_v52  ;;  %v1246_v52 = vld [vmem:[%s395_s27] ss:$0 sm:$0xff] }
  0x4a   : > { %1267 = vmatpush3.bf16.msra.mxu0 %v1388_v53  ;;  %1289 = vmatpush3.bf16.msra.mxu1 %v1389_v54 }
  0x4b   : > { %1299 = vmatprep.subr.bf16.mxu0 %v1417_v35 }
  0xe5   : > { %v497_v57 = vpop.f32.mrf.mxu0  ;;  %v538_v58 = vpop.f32.mrf.mxu1 }
  0xe7   : > { %v499_v59 = vpop.f32.mrf.mxu0  ;;  %v540_v60 = vpop.f32.mrf.mxu1 }
  0xe9   : > { %v501_v63 = vpop.f32.mrf.mxu0  ;;  %v542_v0 = vpop.f32.mrf.mxu1 }
  0xeb   : > { %v502_v4 = vpop.f32.mrf.mxu0  ;;  %v543_v5 = vpop.f32.mrf.mxu1 }
  0xed   : > { %v622_v8 = vpop.f32.mrf.mxu0  ;;  %v663_v9 = vpop.f32.mrf.mxu1 }
  0xee   : > { %v623_v10 = vadd.f32 %v622_v8, %v497_v57  ;;  %v664_v11 = vadd.f32 %v663_v9, %v538_v58 }
  0xef   : > { %v624_v14 = vpop.f32.mrf.mxu0  ;;  %v665_v15 = vpop.f32.mrf.mxu1 }
  0xf0   : > { %v692_v16 = vadd.f32 %v675_v6, %v623_v10  ;;  %v694_v17 = vadd.f32 %v683_v7, %v664_v11  ;;  %v625_v18 = vadd.f32 %v624_v14, %v499_v59  ;;  %v666_v19 = vadd.f32 %v665_v15, %v540_v60 }
  0xf1   : > { %v626_v20 = vpop.f32.mrf.mxu0  ;;  %v667_v21 = vpop.f32.mrf.mxu1 }
  0xf2   : > { %v693_v22 = vadd.f32 %v679_v12, %v625_v18  ;;  %v695_v23 = vadd.f32 %v687_v13, %v666_v19  ;;  %v696_v24 = vmax.f32 %v692_v16, 0.0  ;;  %v698_v25 = vmax.f32 %v694_v17, 0.0 }
  0xf3   : > { %v627_v26 = vpop.f32.mrf.mxu0  ;;  %v668_v27 = vpop.f32.mrf.mxu1 }
  0xf4   : > { %v697_v28 = vmax.f32 %v693_v22, 0.0  ;;  %v699_v29 = vmax.f32 %v695_v23, 0.0  ;;  %v700_v32 = vpack.c.bf16 %v696_v24, %v696_v24  ;;  %v702_v33 = vpack.c.bf16 %v698_v25, %v698_v25 }
  0xf6   : > { %v701_v30 = vpack.c.bf16 %v697_v28, %v697_v28  ;;  %v703_v31 = vpack.c.bf16 %v699_v29, %v699_v29 }
  0xf8   : > { %999 = vmatprep.mubr.bf16.mxu0 %v701_v30  ;;  %1039 = vmatprep.mubr.bf16.mxu1 %v703_v31 }
  0xf9   : > { %1000 = vmatmul.mubr.bf16.vlgmr.msra.gmra.mxu0 %v700_v32  ;;  %1040 = vmatmul.mubr.bf16.vlgmr.msra.gmra.mxu1 %v702_v33 }
  0xfa   : > { %1300 = vmatpush3.bf16.msra.mxu0 %v1390_v34  ;;  %1303 = vmatprep.mubr.msk.bf16.mxu0 %vm1418_vm1, %v1417_v35 }
  0xfb   : > { %1301 = vmatprep.subr.bf16.mxu0 %v1417_v35 }
  0xfe   : > { %1302 = vmatpush3.bf16.msra.mxu0 %v1391_v36 }
 0x1b9   : > { %v1268_v37 = vpop.f32.mrf.mxu0  ;;  %v1290_v38 = vpop.f32.mrf.mxu1 }
 0x1bb   : > { %v1269_v40 = vpop.f32.mrf.mxu0  ;;  %v1291_v41 = vpop.f32.mrf.mxu1 }
 0x1bc   : > { %v1270_v42 = vadd.f32 %v1269_v40, %v1268_v37  ;;  %v1292_v46 = vadd.f32 %v1291_v41, %v1290_v38 }
 0x1bd   : > { %v1271_v43 = vpop.f32.mrf.mxu0  ;;  %v1293_v44 = vpop.f32.mrf.mxu1 }
 0x1be   : > { %v1002_v45 = vadd.f32 %v1270_v42, %v1213_v39 }
 0x1bf   : > { %v1272_v47 = vpop.f32.mrf.mxu0  ;;  %v1294_v48 = vpop.f32.mrf.mxu1 }
 0x1c0   : > { %v1042_v49 = vadd.f32 %v1292_v46, %v1002_v45 }
 0x1c2   : > { %v1047_v50 = vmax.f32 %v1042_v49, 0.0 }
 0x1c4   : > { %v1048_v51 = vpack.c.bf16 %v1047_v50, %v1047_v50 }
 0x1c6   : > { %1304 = vmatmul.mubr.msk.bf16.vlgmr.msra.gmra.mxu0 %vm459_vm0, %v1048_v51 }
 0x286   : > { %v1109_v53 = vpop.f32.mrf.mxu0 }
 0x287   : > { %v1110_v54 = vadd.f32 %v1246_v52, %v1109_v53 }
 0x288   : > { %v1305_v55 = vpop.f32.mrf.mxu0 }
 0x289   : > { %1115 = vst [vmem:[%s399_s15] sm:$0xff] %v1110_v54 }
 0x28a   : > { %v1112_v56 = vpop.f32.mrf.mxu0 }
 0x28c   : > { %v1306_v57 = vpop.f32.mrf.mxu0 }
 0x28d PF: > { %p16_p9 = scmp.ge.s32.totalorder %s1486_s13, 4   ;;  %s1697_s30 = smov %s1410_s10 }
 0x28e   : > { %s1698_s10 = smov %s1495_s16  ;;  %s1699_s11 = smov %s1486_s13 }
 0x28f   :  { %18 = sbr.rel (!%p16_p9) target bundleno = 2 (0x2), region = 135 }

</bundles_post_ra>
